<compile_context>
chip_gen: v6e
topology: v6e:2x2x1
jax: 0.10.0
libtpu: 0.0.40
codegen_flags: <defaults>
</compile_context>

<pallas_src>
import functools

import jax
import jax.numpy as jnp
from jax import lax
from jax.experimental import pallas as pl
from jax.experimental.pallas import tpu as pltpu

LANE = 128
BN_EPS = 1e-5


def autopad(k, p=None, d=1):
    """Pad to 'same' shape outputs (mirror of the PyTorch helper)."""
    if d > 1:
        k = d * (k - 1) + 1 if isinstance(k, int) else [d * (x - 1) + 1 for x in k]
    if p is None:
        p = k // 2 if isinstance(k, int) else [x // 2 for x in k]
    return p


def _round_up(c, q=LANE):
    return ((c + q - 1) // q) * q


def _pick_tile(total, target, quantum=1):
    if total <= target:
        return total
    for t in range(min(target, total), 0, -1):
        if total % t == 0 and t % quantum == 0:
            return t
    return total


def _apply_act(y, act):
    if act == "relu":
        return jnp.maximum(y, 0.0)
    if act == "silu":
        # EUP-friendly SiLU: exp on the EUP + approximate reciprocal (vrcp slot).
        return y * pl.reciprocal(1.0 + jnp.exp(-y), approx=True)
    return y


# ---------------------------------------------------------------------------
# Fused 1x1 conv + folded BN + optional residual + activation
# ---------------------------------------------------------------------------
def _conv1x1_kernel(x_ref, w_ref, scale_ref, bias_ref, *rest, act, has_res):
    """x_ref: (1, tm, Cin_p) bf16; w_ref: (Cin_p, Cout_p) bf16 (grid-resident);
    scale/bias: (1, Cout_p) f32 folded BN; res: (1, tm, Cout_p); o: (1, tm, Cout_p)."""
    if has_res:
        res_ref, o_ref = rest
    else:
        (o_ref,) = rest
    acc = jnp.dot(x_ref[0], w_ref[...], preferred_element_type=jnp.float32)
    y = acc * scale_ref[...] + bias_ref[...]
    if has_res:
        y = y + res_ref[0].astype(jnp.float32)
    o_ref[0] = _apply_act(y, act).astype(o_ref.dtype)


def conv1x1_layer(x, w, scale, bias, *, s=1, act="none", residual=None,
                  out_dtype=jnp.bfloat16, tile_m=None):
    """x: (N, H, W, Cin_p) NHWC, lane-padded channels.  Returns (N, Ho, Wo, Cout_p)."""
    if s > 1:
        x = x[:, ::s, ::s, :]
    N, Ho, Wo, Cin = x.shape
    Cout = w.shape[1]
    M = Ho * Wo
    tm = tile_m or _pick_tile(M, 512, quantum=8)
    assert M % tm == 0
    x2 = x.reshape(N, M, Cin)            # free (merge of contiguous dims)
    has_res = residual is not None

    in_specs = [
        pl.BlockSpec((1, tm, Cin), lambda n, r: (n, r, 0)),
        pl.BlockSpec((Cin, Cout), lambda n, r: (0, 0)),     # resident weights
        pl.BlockSpec((1, Cout), lambda n, r: (0, 0)),
        pl.BlockSpec((1, Cout), lambda n, r: (0, 0)),
    ]
    args = [x2, w, scale, bias]
    if has_res:
        in_specs.append(pl.BlockSpec((1, tm, Cout), lambda n, r: (n, r, 0)))
        args.append(residual.reshape(N, M, Cout))

    out_bytes = N * M * Cout * (4 if out_dtype == jnp.float32 else 2)
    bytes_accessed = (x2.size * x2.dtype.itemsize + w.size * w.dtype.itemsize
                      + out_bytes)
    out = pl.pallas_call(
        functools.partial(_conv1x1_kernel, act=act, has_res=has_res),
        out_shape=jax.ShapeDtypeStruct((N, M, Cout), out_dtype),
        grid_spec=pltpu.PrefetchScalarGridSpec(
            num_scalar_prefetch=0,
            grid=(N, M // tm),
            in_specs=in_specs,
            out_specs=pl.BlockSpec((1, tm, Cout), lambda n, r: (n, r, 0)),
        ),
        compiler_params=pltpu.CompilerParams(
            dimension_semantics=("parallel", "parallel"),
            vmem_limit_bytes=32 * 1024 * 1024),
        cost_estimate=pl.CostEstimate(
            flops=int(2 * N * M * Cin * Cout),
            transcendentals=int(N * M * Cout if act == "silu" else 0),
            bytes_accessed=int(bytes_accessed)),
    )(*args)
    return out.reshape(N, Ho, Wo, Cout)


# ---------------------------------------------------------------------------
# Fused 3x3 ('same', stride 1) conv + folded BN + optional masked residual + act
# ---------------------------------------------------------------------------
def _conv3x3_kernel(x_hbm, w_ref, scale_ref, bias_ref, *rest,
                    act, has_res, K, Wp, Wo, tho, win_rows):
    """x_hbm: (N, Hp*Wp + K-1, Cin_p) raw HBM ref (spatially padded, flattened).
    Each grid step manually DMAs an overlapping (halo) row window into a
    double-buffered VMEM scratch; the K*K taps are contiguous (tho*Wp, Cin_p)
    slabs of that window -> clean 2-D MXU matmuls, no per-tap relayout."""
    if has_res:
        res_ref, rmask_ref, o_ref, buf, sem = rest
    else:
        o_ref, buf, sem = rest

    n = pl.program_id(0)
    r = pl.program_id(1)
    R = pl.num_programs(1)
    nsteps = pl.num_programs(0) * R
    step = n * R + r
    slot = step % 2

    def start_copy(nn, rr, slt):
        pltpu.make_async_copy(
            x_hbm.at[nn, pl.ds(rr * (tho * Wp), win_rows), :],
            buf.at[slt], sem.at[slt]).start()

    # Prime the pipeline on the very first grid step.
    @pl.when(step == 0)
    def _():
        start_copy(n, r, slot)

    # Prefetch the next step's window into the other slot (overlap DMA/compute).
    @pl.when(step + 1 < nsteps)
    def _():
        nxt_inner = r + 1 < R
        start_copy(jnp.where(nxt_inner, n, n + 1),
                   jnp.where(nxt_inner, r + 1, 0),
                   1 - slot)

    # Wait for the current window (issued by the previous step or the prime).
    pltpu.make_async_copy(
        x_hbm.at[n, pl.ds(r * (tho * Wp), win_rows), :],
        buf.at[slot], sem.at[slot]).wait()

    acc = None
    for kh in range(K):
        for kw in range(K):
            lhs = buf[slot, pl.ds(kh * Wp + kw, tho * Wp), :]
            part = jnp.dot(lhs, w_ref[kh * K + kw],
                           preferred_element_type=jnp.float32)
            acc = part if acc is None else acc + part
    y = acc * scale_ref[...] + bias_ref[...]          # (tho*Wp, Cout_p) f32

    # Only the first Wo of every Wp "wide" columns are valid conv outputs.
    for i in range(tho):
        yi = y[i * Wp:i * Wp + Wo, :]
        if has_res:
            yi = yi + res_ref[0, i].astype(jnp.float32) * rmask_ref[...]
        o_ref[0, i] = _apply_act(yi, act).astype(o_ref.dtype)


def conv3x3_layer(x, w9, scale, bias, *, act="none", residual=None, res_mask=None,
                  out_dtype=jnp.bfloat16, tile_h=None):
    """x: (N, H, W, Cin_p).  3x3 conv, stride 1, pad 1.  Returns (N, H, W, Cout_p)."""
    N, H, W, Cin = x.shape
    Cout = w9.shape[2]
    K = 3
    Hp, Wp = H + 2, W + 2
    Ho, Wo = H, W
    tho = tile_h or _pick_tile(Ho, max(1, 512 // Wo))
    assert Ho % tho == 0
    R = Ho // tho
    win_rows = (tho + K - 1) * Wp + (K - 1)

    # Spatial zero pad + flatten, plus K-1 slack rows so every shifted tap slab
    # stays in bounds (wrapped values only ever land in discarded columns).
    xp = jnp.pad(x, ((0, 0), (1, 1), (1, 1), (0, 0)))
    x_flat = jnp.pad(xp.reshape(N, Hp * Wp, Cin), ((0, 0), (0, K - 1), (0, 0)))

    has_res = residual is not None
    in_specs = [
        pl.BlockSpec(memory_space=pl.ANY),                       # raw HBM, manual DMA
        pl.BlockSpec((K * K, Cin, Cout), lambda n, r: (0, 0, 0)),
        pl.BlockSpec((1, Cout), lambda n, r: (0, 0)),
        pl.BlockSpec((1, Cout), lambda n, r: (0, 0)),
    ]
    args = [x_flat, w9, scale, bias]
    if has_res:
        in_specs += [
            pl.BlockSpec((1, tho, Wo, Cout), lambda n, r: (n, r, 0, 0)),
            pl.BlockSpec((1, Cout), lambda n, r: (0, 0)),
        ]
        args += [residual, res_mask]

    bytes_accessed = (x_flat.size * x_flat.dtype.itemsize
                      + w9.size * w9.dtype.itemsize
                      + N * Ho * Wo * Cout * (4 if out_dtype == jnp.float32 else 2))
    out = pl.pallas_call(
        functools.partial(_conv3x3_kernel, act=act, has_res=has_res,
                          K=K, Wp=Wp, Wo=Wo, tho=tho, win_rows=win_rows),
        out_shape=jax.ShapeDtypeStruct((N, Ho, Wo, Cout), out_dtype),
        grid_spec=pltpu.PrefetchScalarGridSpec(
            num_scalar_prefetch=0,
            grid=(N, R),
            in_specs=in_specs,
            out_specs=pl.BlockSpec((1, tho, Wo, Cout), lambda n, r: (n, r, 0, 0)),
            scratch_shapes=[
                pltpu.VMEM((2, win_rows, Cin), x.dtype),   # double-buffered halo window
                pltpu.SemaphoreType.DMA((2,)),
            ]),
        # Manual cross-step double buffering assumes sequential grid order.
        compiler_params=pltpu.CompilerParams(
            dimension_semantics=("arbitrary", "arbitrary"),
            vmem_limit_bytes=32 * 1024 * 1024),
        cost_estimate=pl.CostEstimate(
            flops=int(2 * N * Ho * Wp * K * K * Cin * Cout),
            transcendentals=0,
            bytes_accessed=int(bytes_accessed)),
    )(*args)
    return out


# ---------------------------------------------------------------------------
# Fused elementwise residual add + activation (identity-shortcut case)
# ---------------------------------------------------------------------------
def _add_act_kernel(a_ref, b_ref, o_ref, *, act):
    y = a_ref[0].astype(jnp.float32) + b_ref[0].astype(jnp.float32)
    o_ref[0] = _apply_act(y, act).astype(o_ref.dtype)


def add_act_layer(a, b, *, act="relu", out_dtype=jnp.float32, tile_m=None):
    N, H, W, C = a.shape
    M = H * W
    tm = tile_m or _pick_tile(M, 1024, quantum=8)
    assert M % tm == 0
    out = pl.pallas_call(
        functools.partial(_add_act_kernel, act=act),
        out_shape=jax.ShapeDtypeStruct((N, M, C), out_dtype),
        grid_spec=pltpu.PrefetchScalarGridSpec(
            num_scalar_prefetch=0,
            grid=(N, M // tm),
            in_specs=[pl.BlockSpec((1, tm, C), lambda n, r: (n, r, 0)),
                      pl.BlockSpec((1, tm, C), lambda n, r: (n, r, 0))],
            out_specs=pl.BlockSpec((1, tm, C), lambda n, r: (n, r, 0))),
        compiler_params=pltpu.CompilerParams(
            dimension_semantics=("parallel", "parallel"),
            vmem_limit_bytes=32 * 1024 * 1024),
    )(a.reshape(N, M, C), b.reshape(N, M, C))
    return out.reshape(N, H, W, C)


# ---------------------------------------------------------------------------
# Parameter preparation (layout + BN folding + lane padding)
# ---------------------------------------------------------------------------
def _fold_bn(gamma, beta, mean, var, conv_bias=None, eps=BN_EPS):
    scale = gamma / jnp.sqrt(var + eps)
    bias = beta - mean * scale
    if conv_bias is not None:
        bias = bias + conv_bias * scale
    return scale, bias


def _pad_vec(v, cp):
    return jnp.pad(v.astype(jnp.float32), (0, cp - v.shape[0])).reshape(1, cp)


def _prep_w1x1(w_oihw, cin_p, cout_p):
    w = jnp.transpose(w_oihw[:, :, 0, 0], (1, 0)).astype(jnp.float32)   # (C1, C2)
    w = jnp.pad(w, ((0, cin_p - w.shape[0]), (0, cout_p - w.shape[1])))
    return w.astype(jnp.bfloat16)


def _prep_w3x3(w_oihw, cin_p, cout_p):
    C2, C1, K, _ = w_oihw.shape
    w = jnp.transpose(w_oihw, (2, 3, 1, 0)).reshape(K * K, C1, C2).astype(jnp.float32)
    w = jnp.pad(w, ((0, 0), (0, cin_p - C1), (0, cout_p - C2)))
    return w.astype(jnp.bfloat16)


# ---------------------------------------------------------------------------
# BottleNeck_FasterBlock forward (inference)
# ---------------------------------------------------------------------------
def bottleneck_fasterblock_forward(x_nchw, params, *, stride=1, shortcut=False,
                                   variant="d", act="relu", att=False, n_div=4,
                                   tile_m=None, tile_h=None):
    """NCHW f32 in -> NCHW f32 out.  Mirrors BottleNeck_FasterBlock.forward."""
    assert stride == 1, "TODO(synk): stride=2 path not implemented"
    assert not att, "TODO(synk): SELayer (att=True) not implemented"
    del variant  # for stride == 1 both variants are identical

    N, ch_in, H, W = x_nchw.shape
    p2a, p2b = params["branch2a"], params["branch2b"]
    pfc, ppc = params["firstconv"], params["pconv"]
    pm1, pm2 = params["mlp1"], params["mlp2"]
    psh = params.get("short")

    width = p2a["w"].shape[0]
    dim = pfc["w"].shape[0]                  # ch_out * expansion
    hidden = pm1["w"].shape[0]
    dim_conv3 = dim // n_div
    cin_p, width_p, dim_p, hid_p = map(_round_up, (ch_in, width, dim, hidden))

    # Single layout change for the whole block: NCHW -> NHWC, lane-pad channels,
    # cast activations to bf16 (MXU operands; all accumulation is f32 in-kernel).
    x = jnp.transpose(x_nchw, (0, 2, 3, 1)).astype(jnp.float32)
    x = jnp.pad(x, ((0, 0), (0, 0), (0, 0), (0, cin_p - ch_in))).astype(jnp.bfloat16)

    ones_dim = jnp.ones((1, dim_p), jnp.float32)
    zeros_dim = jnp.zeros((1, dim_p), jnp.float32)

    # branch2a: 1x1 conv (+bias) + BN + relu
    s2a, b2a = _fold_bn(p2a["gamma"], p2a["beta"], p2a["mean"], p2a["var"], p2a["b"])
    y = conv1x1_layer(x, _prep_w1x1(p2a["w"], cin_p, width_p),
                      _pad_vec(s2a, width_p), _pad_vec(b2a, width_p),
                      act=act, tile_m=tile_m)

    # branch2b: 3x3 conv (+bias) + BN + relu
    s2b, b2b = _fold_bn(p2b["gamma"], p2b["beta"], p2b["mean"], p2b["var"], p2b["b"])
    y = conv3x3_layer(y, _prep_w3x3(p2b["w"], width_p, width_p),
                      _pad_vec(s2b, width_p), _pad_vec(b2b, width_p),
                      act=act, tile_h=tile_h)

    # branch2c: FasterBlock ------------------------------------------------
    # firstConv: 1x1 conv + BN + SiLU (inc != dim always holds here)
    sfc, bfc = _fold_bn(pfc["gamma"], pfc["beta"], pfc["mean"], pfc["var"])
    fb_short = conv1x1_layer(y, _prep_w1x1(pfc["w"], width_p, dim_p),
                             _pad_vec(sfc, dim_p), _pad_vec(bfc, dim_p),
                             act="silu", tile_m=tile_m)

    # Partial_conv3 (split_cat): conv the first dim//n_div channels, pass the
    # rest through.  One fused kernel: embedded small conv + masked residual.
    untouched = ((jnp.arange(dim_p) >= dim_conv3) & (jnp.arange(dim_p) < dim))
    y = conv3x3_layer(fb_short, _prep_w3x3(ppc["w"], dim_p, dim_p),
                      ones_dim, zeros_dim, act="none",
                      residual=fb_short,
                      res_mask=untouched.astype(jnp.float32).reshape(1, dim_p),
                      tile_h=tile_h)

    # mlp: 1x1 conv + BN + relu, then 1x1 conv fused with the FasterBlock
    # residual add (DropPath == identity at inference).
    sm1, bm1 = _fold_bn(pm1["gamma"], pm1["beta"], pm1["mean"], pm1["var"])
    y = conv1x1_layer(y, _prep_w1x1(pm1["w"], dim_p, hid_p),
                      _pad_vec(sm1, hid_p), _pad_vec(bm1, hid_p),
                      act="relu", tile_m=tile_m)
    y = conv1x1_layer(y, _prep_w1x1(pm2["w"], hid_p, dim_p),
                      ones_dim, zeros_dim, act="none",
                      residual=fb_short, tile_m=tile_m)

    # shortcut branch + final ReLU ------------------------------------------
    if shortcut:
        assert ch_in == dim
        out = add_act_layer(y, x, act="relu", out_dtype=jnp.float32, tile_m=tile_m)
    else:
        ssh, bsh = _fold_bn(psh["gamma"], psh["beta"], psh["mean"], psh["var"], psh["b"])
        out = conv1x1_layer(x, _prep_w1x1(psh["w"], cin_p, dim_p),
                            _pad_vec(ssh, dim_p), _pad_vec(bsh, dim_p),
                            s=stride, act="relu", residual=y,
                            out_dtype=jnp.float32, tile_m=tile_m)

    return jnp.transpose(out[..., :dim], (0, 3, 1, 2))


# ---------------------------------------------------------------------------
# Pure-JAX reference (mirrors the bf16 activation storage of the Pallas path)
# ---------------------------------------------------------------------------
def _q(v):
    return v.astype(jnp.bfloat16).astype(jnp.float32)


def _ref_layer(x, p, *, k, s=1, act=None, use_bn=True, eps=BN_EPS):
    pad = autopad(k)
    y = lax.conv_general_dilated(
        x, jnp.transpose(p["w"].astype(jnp.float32), (2, 3, 1, 0)),
        window_strides=(s, s), padding=[(pad, pad), (pad, pad)],
        dimension_numbers=("NHWC", "HWIO", "NHWC"))
    if p.get("b") is not None:
        y = y + p["b"]
    if use_bn:
        scale = p["gamma"] / jnp.sqrt(p["var"] + eps)
        y = (y - p["mean"]) * scale + p["beta"]
    if act == "relu":
        y = jnp.maximum(y, 0.0)
    elif act == "silu":
        y = y * jax.nn.sigmoid(y)
    return y


def reference_forward(x_nchw, params, *, stride=1, shortcut=False, act="relu", n_div=4):
    assert stride == 1
    dim = params["firstconv"]["w"].shape[0]
    dc3 = dim // n_div
    x = _q(jnp.transpose(x_nchw, (0, 2, 3, 1)).astype(jnp.float32))
    a = _q(_ref_layer(x, params["branch2a"], k=1, act=act))
    b = _q(_ref_layer(a, params["branch2b"], k=3, act=act))
    fc = _q(_ref_layer(b, params["firstconv"], k=1, act="silu"))
    x1 = _ref_layer(fc[..., :dc3], params["pconv"], k=3, act=None, use_bn=False)
    sm = _q(jnp.concatenate([x1, fc[..., dc3:]], axis=-1))
    m1 = _q(_ref_layer(sm, params["mlp1"], k=1, act="relu"))
    m2 = _ref_layer(m1, params["mlp2"], k=1, act=None, use_bn=False)
    c = _q(m2 + fc)
    if shortcut:
        out = jnp.maximum(c + x, 0.0)
    else:
        sh = _ref_layer(x, params["short"], k=1, s=stride, act=None)
        out = jnp.maximum(c + sh, 0.0)
    return jnp.transpose(out, (0, 3, 1, 2))


# ---------------------------------------------------------------------------
# Deterministic parameter construction + self-test
# ---------------------------------------------------------------------------
def _make_convnorm(key, cin, cout, k, with_bias=True):
    ks = jax.random.split(key, 6)
    fan = cin * k * k
    w = (jax.random.normal(ks[0], (cout, cin, k, k), jnp.float32)
         / (fan ** 0.5)).astype(jnp.bfloat16)
    b = (0.1 * jax.random.normal(ks[1], (cout,), jnp.float32)) if with_bias else None
    return dict(
        w=w, b=b,
        gamma=1.0 + 0.1 * jax.random.normal(ks[2], (cout,), jnp.float32),
        beta=0.2 * jax.random.normal(ks[3], (cout,), jnp.float32),
        mean=0.2 * jax.random.normal(ks[4], (cout,), jnp.float32),
        var=0.5 + jnp.abs(jax.random.normal(ks[5], (cout,), jnp.float32)),
    )


def _make_conv(key, cin, cout, k):
    fan = cin * k * k
    w = (jax.random.normal(key, (cout, cin, k, k), jnp.float32)
         / (fan ** 0.5)).astype(jnp.bfloat16)
    return dict(w=w, b=None)


def _make_params(key, ch_in, ch_out, *, shortcut, expansion=4, n_div=4, mlp_ratio=2):
    width = ch_out
    dim = ch_out * expansion
    hidden = dim * mlp_ratio
    ks = jax.random.split(key, 7)
    return dict(
        branch2a=_make_convnorm(ks[0], ch_in, width, 1),
        branch2b=_make_convnorm(ks[1], width, width, 3),
        firstconv=_make_convnorm(ks[2], width, dim, 1, with_bias=False),
        pconv=_make_conv(ks[3], dim // n_div, dim // n_div, 3),
        mlp1=_make_convnorm(ks[4], dim, hidden, 1, with_bias=False),
        mlp2=_make_conv(ks[5], hidden, dim, 1),
        short=None if shortcut else _make_convnorm(ks[6], ch_in, dim, 1),
    )


def _run_case(key, *, N, ch_in, ch_out, H, W, shortcut, tile_m, tile_h):
    kx, kp = jax.random.split(key)
    x = jax.random.normal(kx, (N, ch_in, H, W), jnp.float32)
    params = _make_params(kp, ch_in, ch_out, shortcut=shortcut)
    out = bottleneck_fasterblock_forward(x, params, stride=1, shortcut=shortcut,
                                         tile_m=tile_m, tile_h=tile_h)
    out = jax.block_until_ready(out)
    ref = reference_forward(x, params, stride=1, shortcut=shortcut)
    assert out.shape == (N, ch_out * 4, H, W), out.shape
    err = float(jnp.max(jnp.abs(out - ref)))
    assert jnp.allclose(out, ref, atol=3e-2, rtol=3e-2), f"max abs err {err}"
    return err


if __name__ == "__main__":
    key = jax.random.PRNGKey(0)
    k1, k2 = jax.random.split(key)
    # Projection shortcut: the short 1x1 conv is fused with the residual add + ReLU.
    _run_case(k1, N=2, ch_in=8, ch_out=4, H=16, W=16,
              shortcut=False, tile_m=64, tile_h=8)
    # Identity shortcut (ch_in == 4*ch_out): fused elementwise add + ReLU kernel.
    _run_case(k2, N=2, ch_in=16, ch_out=4, H=16, W=16,
              shortcut=True, tile_m=64, tile_h=8)
    print("KERNEL_OK")
</pallas_src>

<mosaic_0001>
module attributes {stable_mosaic.version = 11 : i64} {
  func.func @_conv1x1_kernel(%arg0: i32, %arg1: i32, %arg2: memref<1x64x128xbf16, #tpu.memory_space<vmem>>, %arg3: memref<128x128xbf16, #tpu.memory_space<vmem>>, %arg4: memref<1x128xf32, #tpu.memory_space<vmem>>, %arg5: memref<1x128xf32, #tpu.memory_space<vmem>>, %arg6: memref<1x64x128xbf16, #tpu.memory_space<vmem>>) attributes {dimension_semantics = [#tpu.dimension_semantics<parallel>, #tpu.dimension_semantics<parallel>], iteration_bounds = array<i64: 2, 4>, scalar_prefetch = 0 : i64, scratch_operands = 0 : i64, tpu.core_type = #tpu.core_type<tc>, window_params = [{transform_indices = @transform_0, window_bounds = array<i64: 1, 64, 128>}, {pipeline_mode = #tpu.pipeline_mode<synchronous>, transform_indices = @transform_1, window_bounds = array<i64: 128, 128>}, {pipeline_mode = #tpu.pipeline_mode<synchronous>, transform_indices = @transform_2, window_bounds = array<i64: 1, 128>}, {pipeline_mode = #tpu.pipeline_mode<synchronous>, transform_indices = @transform_3, window_bounds = array<i64: 1, 128>}, {transform_indices = @transform_4, window_bounds = array<i64: 1, 64, 128>}]} {
    %c0 = arith.constant 0 : index
    %c0_0 = arith.constant 0 : index
    %c0_1 = arith.constant 0 : index
    %0 = vector.load %arg2[%c0, %c0_0, %c0_1] : memref<1x64x128xbf16, #tpu.memory_space<vmem>>, vector<1x64x128xbf16>
    %1 = vector.shape_cast %0 : vector<1x64x128xbf16> to vector<64x128xbf16>
    %c0_2 = arith.constant 0 : index
    %c0_3 = arith.constant 0 : index
    %2 = vector.load %arg3[%c0_2, %c0_3] : memref<128x128xbf16, #tpu.memory_space<vmem>>, vector<128x128xbf16>
    %cst = arith.constant dense<0.000000e+00> : vector<64x128xf32>
    %3 = tpu.matmul %1, %2, %cst {dimension_numbers = #tpu.dot_dimension_numbers<[1], [0], [0], [1], [0, 0, 1, 1], [], []>} : vector<64x128xbf16>, vector<128x128xbf16>, vector<64x128xf32> -> vector<64x128xf32>
    %c0_4 = arith.constant 0 : index
    %c0_5 = arith.constant 0 : index
    %4 = vector.load %arg4[%c0_4, %c0_5] : memref<1x128xf32, #tpu.memory_space<vmem>>, vector<1x128xf32>
    %5 = vector.broadcast %4 : vector<1x128xf32> to vector<64x128xf32>
    %6 = arith.mulf %3, %5 : vector<64x128xf32>
    %c0_6 = arith.constant 0 : index
    %c0_7 = arith.constant 0 : index
    %7 = vector.load %arg5[%c0_6, %c0_7] : memref<1x128xf32, #tpu.memory_space<vmem>>, vector<1x128xf32>
    %8 = vector.broadcast %7 : vector<1x128xf32> to vector<64x128xf32>
    %9 = arith.addf %6, %8 : vector<64x128xf32>
    %cst_8 = arith.constant 0.000000e+00 : f32
    %10 = vector.broadcast %cst_8 : f32 to vector<64x128xf32>
    %11 = arith.maximumf %9, %10 : vector<64x128xf32>
    %12 = arith.truncf %11 : vector<64x128xf32> to vector<64x128xbf16>
    %c0_9 = arith.constant 0 : index
    %c0_10 = arith.constant 0 : index
    %c0_11 = arith.constant 0 : index
    %13 = vector.load %arg6[%c0_9, %c0_10, %c0_11] : memref<1x64x128xbf16, #tpu.memory_space<vmem>>, vector<1x64x128xbf16>
    %14 = vector.shape_cast %13 : vector<1x64x128xbf16> to vector<64x128xbf16>
    %15 = vector.shape_cast %12 : vector<64x128xbf16> to vector<1x64x128xbf16>
    tpu.vector_store %arg6[%c0_9, %c0_10, %c0_11], %15 {strides = array<i32>} : memref<1x64x128xbf16, #tpu.memory_space<vmem>>, vector<1x64x128xbf16>,
    return
  }
  func.func @transform_0(%arg0: i32, %arg1: i32) -> (i32, i32, i32) {
    %c0_i32 = arith.constant 0 : i32
    %c0_i32_0 = arith.constant 0 : i32
    return %arg0, %arg1, %c0_i32 : i32, i32, i32
  }
  func.func @transform_1(%arg0: i32, %arg1: i32) -> (i32, i32) {
    %c0_i32 = arith.constant 0 : i32
    %c0_i32_0 = arith.constant 0 : i32
    %c0_i32_1 = arith.constant 0 : i32
    return %c0_i32, %c0_i32_0 : i32, i32
  }
  func.func @transform_2(%arg0: i32, %arg1: i32) -> (i32, i32) {
    %c0_i32 = arith.constant 0 : i32
    %c0_i32_0 = arith.constant 0 : i32
    %c0_i32_1 = arith.constant 0 : i32
    return %c0_i32, %c0_i32_0 : i32, i32
  }
  func.func @transform_3(%arg0: i32, %arg1: i32) -> (i32, i32) {
    %c0_i32 = arith.constant 0 : i32
    %c0_i32_0 = arith.constant 0 : i32
    %c0_i32_1 = arith.constant 0 : i32
    return %c0_i32, %c0_i32_0 : i32, i32
  }
  func.func @transform_4(%arg0: i32, %arg1: i32) -> (i32, i32, i32) {
    %c0_i32 = arith.constant 0 : i32
    %c0_i32_0 = arith.constant 0 : i32
    return %arg0, %arg1, %c0_i32 : i32, i32, i32
  }
}

</mosaic_0001>

<bundles_post_ra>
// kernel: tpu_custom_call.1
= control target key start
LH: loop header
LB: loop body
LE: loop exit
PB: predicated region body
PF: predicated region fallthrough
CT: control target
= control target key end

     0   :  { %s1243_s0 = inlined_call_operand.hbm [shape: bf16[2,256,128], index: 0, kind: input, shape index: {}]   ;;  %s1244_s1 = inlined_call_operand.hbm [shape: bf16[128,128], index: 1, kind: input, shape index: {}]   ;;  %s1245_s2 = inlined_call_operand.vmem [shape: f32[1,128], index: 2, kind: input, shape index: {}]   ;;  %s1246_s3 = inlined_call_operand.vmem [shape: f32[1,128], index: 3, kind: input, shape index: {}]   ;;  %s1247_s4 = inlined_call_operand.hbm [shape: bf16[2,256,128], index: 4, kind: output, shape index: {}]  }
   0x1   :  { %1256 = sst [smem:[#allocation15_spill]] %s1244_s1 }
   0x2   :  { %1257 = sst [smem:[#allocation16_spill]] %s1247_s4 }
   0x3   :  { %9 = vsyncpa [#allocation3], 0 }
   0x4   :  { %11 = vsyncpa [#allocation3 + $0x1], 0 }
   0x5   :  { %12 = vsyncpa [#allocation6], 0 }
   0x6   :  { %13 = vsyncpa [#allocation4], 0 }
   0x7   :  { %15 = vsyncpa [#allocation4 + $0x1], 0  ;;  %s1024_s15 = smov 0   ;;  %s1026_s16 = smov 0  }
   0x8   :  { %s1028_s17 = smov 0   ;;  %s1030_s18 = smov 0  }
   0x9   :  { %s1032_s19 = smov 0   ;;  %s1034_s20 = smov 0  }
   0xa   :  { %s1036_s21 = smov 0   ;;  %s1038_s22 = smov 0  }
   0xb LB: > { %1258 = sst [smem:[#allocation11_spill]] %s962_s15  ;;  %s607_s23 = sadd.s32 4294967295, %s990_s22   ;;  %s990_s22 = sphi %s1038_s22, %s21_s22   ;;  %s986_s21 = sphi %s1036_s21, %s1284_s21   ;;  %s982_s20 = sphi %s1034_s20, %s1279_s20   ;;  %s978_s19 = sphi %s1032_s19, %s1283_s19   ;;  %s974_s18 = sphi %s1030_s18, %s1278_s18   ;;  %s970_s17 = sphi %s1028_s17, %s1282_s17   ;;  %s966_s16 = sphi %s1026_s16, %s1281_s16   ;;  %s962_s15 = sphi %s1024_s15, %s1280_s15  }
   0xc   : > { %1259 = sst [smem:[#allocation12_spill]] %s982_s20  ;;  %s608_s24 = sadd.s32 4294967294, %s990_s22  }
   0xd   : > { %p55_p0 = scmp.ne.s32.totalorder %s966_s16, %s962_s15  ;;  %p1068_p1 = scmp.eq.s32.totalorder %s607_s23, 0 }
   0xe   : > { %p1072_p2 = scmp.eq.s32.totalorder %s607_s23, 7  ;;  %p150_p3 = scmp.eq.s32.totalorder %s608_s24, 7 }
   0xf   : > { %p1078_p4 = por %p1068_p1, %p55_p0  ;;  %p609_p5 = scmp.ge.s32.totalorder %s990_s22, 1 }
  0x10   : > { %p1083_p6 = por %p150_p3, %p55_p0  ;;  %p157_p7 = scmp.lt.s32.totalorder %s990_s22, 9 }
  0x11   : > { %s1262_s27 = scalar_select %p1078_p4, 1, 0 }
  0x12   : > { %s1263_s28 = scalar_select %p1083_p6, 1, 0 }
  0x13   : > { %p1088_p8 = pnand %p609_p5, %p157_p7  ;;  %s992_s30 = smov [#allocation5]  }
  0x14   : > { %1264 = sst [smem:[#allocation13_spill]] %s1263_s28  ;;  %s169_s5 = sshll.u32 %s992_s30, 4  ;;  %s170_s5 = int_to_ptr.vmem [resolvable:$true] %s169_s5 }
  0x15   : > { %p739_p9 = pneg %p1088_p8  ;;  %s847_s6 = scalar_lea.vmem %s170_s5, 1024 }
  0x16   : > { %p848_p12 = scmp.ne.s32.totalorder %s170_s5, %s847_s6  ;;  %p855_p3 = scmp.lt.s32.totalorder %s170_s5, %s170_s5 }
  0x17   : > { %p740_p10 = pnand %p739_p9, %p1068_p1  ;;  %p856_p6 = scmp.lt.s32.totalorder %s847_s6, %s847_s6 }
  0x19   : > { %p838_p11 = pneg %p740_p10  ;;  %p857_p4 = por %p856_p6, %p855_p3 }
  0x1b   : > { %p850_p13 = pnand %p848_p12, %p838_p11 }
  0x1d   : > { %p851_p0 = pneg %p850_p13 }
  0x1f   : > { %p858_p5 = pnand %p857_p4, %p851_p0 }
  0x21   : > { %861 = shalt.err (!%p858_p5)
}
  0x22   : > { %s1249_s7 = smov 64   ;;  %s1250_s8 = smov 4  }
  0x23   : > { %s1266_s1 = sld [smem:[#allocation15_spill]]  ;;  %s30_s11 = sadd.s32 1, %s982_s20 }
  0x24   : > { %p31_p4 = scmp.ge.s32.totalorder %s30_s11, 4  ;;  %s33_s12 = sadd.s32 1, %s986_s21 }
  0x25   : > { %s42_s13 = sadd.s32 1, %s970_s17  ;;  %p49_p6 = scmp.ne.s32.totalorder %s970_s17, %s966_s16 }
  0x26   : > { %s1286_s11 = smov (%p31_p4, %s30_s11), 0  ;;  %s1288_s12 = smov (!%p31_p4, %s33_s12), %s986_s21 }
  0x27   : > { %1267 = sst [smem:[#allocation14_spill]] %s1286_s11  ;;  %s38_s14 = ssub.s32 %s982_s20, %s1286_s11 }
  0x28   : > { %p50_p7 = scmp.eq.s32.totalorder %s990_s22, 0  ;;  %p35_p9 = scmp.ge.s32.totalorder %s1288_s12, 2 }
  0x29   : > { %742 = dma.hbm_to_vmem [thread:$0]  (!%p740_p10), %s1266_s1, 1024, %s170_s5, [#allocation6], %s1249_s7, %s1249_s7, %s1250_s8  }
  0x2a   : > { %p1115_p11 = por %p1072_p2, %p49_p6  ;;  %p1119_p10 = por %p50_p7, %p49_p6 }
  0x2b   : > { %p752_p12 = scmp.lt.s32.totalorder %s990_s22, 8  ;;  %s1290_s12 = smov (%p35_p9, %s1288_s12), 0 }
  0x2c   : > { %s189_s30 = sand.u32 1, %s970_s17   ;;  %s613_s5 = sshll.u32 %s982_s20, 3 }
  0x2d   : > { %s37_s6 = ssub.s32 %s986_s21, %s1290_s12  ;;  %s612_s10 = sshll.u32 %s189_s30, 5 }
  0x2e   : > { %s39_s9 = sor.u32 %s38_s14, %s37_s6  ;;  %s614_s26 = sshll.u32 %s986_s21, 5 }
  0x2f   : > { %p40_p13 = scmp.eq.s32.totalorder %s39_s9, 0  ;;  %s193_s7 = scalar_lea.vmem [#allocation2], %s612_s10 }
  0x30   : > { %s202_s8 = sshll.u32 %s193_s7, 4  ;;  %s199_s11 = sadd.s32 %s614_s26, %s613_s5  ;;  %s203_s8 = int_to_ptr.vmem [resolvable:$true] %s202_s8 }
  0x31   : > { %s1132_s1 = scalar_select %p40_p13, %s970_s17, %s42_s13  }
  0x32   : > { %s615_s28 = sshll.u32 %s199_s11, 6  ;;  %p1138_p2 = pnand %p752_p12, %p1119_p10 }
  0x33   : > { %s201_s14 = scalar_lea.hbm %s1243_s0, %s615_s28  ;;  %s190_s6 = scalar_lea.sflag [#allocation3], %s189_s30 }
  0x34   : > { %p864_p0 = pneg %p1138_p2  ;;  %s875_s7 = scalar_lea.vmem %s203_s8, 512 }
  0x35   : > { %p876_p3 = scmp.ne.s32.totalorder %s203_s8, %s875_s7  ;;  %s995_s13 = smov [#allocation2]  }
  0x36   : > { %s880_s11 = sshll.u32 %s995_s13, 4  ;;  %s881_s11 = int_to_ptr.vmem [resolvable:$false] %s880_s11 }
  0x37   : > { %p878_p5 = pnand %p876_p3, %p864_p0  ;;  %s882_s24 = scalar_lea.vmem %s881_s11, 1024 }
  0x38   : > { %p883_p6 = scmp.lt.s32.totalorder %s203_s8, %s881_s11  ;;  %p884_p7 = scmp.lt.s32.totalorder %s882_s24, %s875_s7 }
  0x39   : > { %p879_p4 = pneg %p878_p5 }
  0x3a   : > { %p885_p9 = por %p884_p7, %p883_p6 }
  0x3c   : > { %p886_p10 = pnand %p885_p9, %p879_p4 }
  0x3e   : > { %889 = shalt.err (!%p886_p10)
}
  0x3f   : > { %s1271_s4 = smov 4   ;;  %s1272_s20 = smov 64  }
  0x40   : > { %746 = dma.hbm_to_vmem [thread:$0]  (!%p1138_p2), %s201_s14, 512, %s203_s8, %s190_s6, %s1272_s20, %s1272_s20, %s1271_s4  }
  0x41   : > { %214 = sbr.rel (%p1088_p8) target bundleno = 327 (0x147), region = 36  ;;  %s1155_s28 = sand.u32 (!%p1088_p8), 1, %s966_s16  }
  0x42   : > { %s617_s30 = sshll.u32 (!%p1088_p8), %s1155_s28, 5  ;;  %s217_s5 = scalar_lea.sflag (!%p1088_p8), [#allocation3], %s1155_s28 }
  0x43   : > { %s1161_s9 = scalar_lea.vmem (!%p1088_p8), [#allocation2], %s617_s30  ;;  %p1273_p12 = scmp.ne.s32.totalorder (!%p1088_p8), %s1262_s27, 0 }
  0x46   : > { %949 = dma.done.wait (%p1273_p12), %s217_s5, 512  }
  0x47   : > { %951 = vsyncadd (%p1273_p12), %s217_s5, 4294966784 }
  0x48   : > { %953 = dma.done.wait (%p1068_p1), [#allocation6], 1024  }
  0x49   : > { %955 = vsyncadd (%p1068_p1), [#allocation6], 4294966272  ;;  %v824_v0 = vld [vmem:[#allocation5 + $0x38] sm:$0xff]   ;;  %v825_v1 = vld [vmem:[#allocation5 + $0x30] sm:$0xff]   ;;  %s643_s8 = sshll.u32 %s974_s18, 3  ;;  %s644_s10 = sshll.u32 %s978_s19, 5 }
  0x4a   : > { %691 = vmatprep.subr.bf16.mxu0 %v824_v0  ;;  %715 = vmatprep.subr.bf16.mxu1 %v824_v0  ;;  %v826_v2 = vld [vmem:[#allocation5 + $0x28] sm:$0xff]   ;;  %v827_v3 = vld [vmem:[#allocation5 + $0x20] sm:$0xff]   ;;  %v833_v5 = vld [vmem:[%s1161_s9 + $0x10] sm:$0xff]   ;;  %s504_s26 = sadd.s32 %s644_s10, %s643_s8  ;;  %s248_s14 = scalar_lea.vmem [#allocation7], %s617_s30 }
  0x4b   : > { %692 = vmatpush3.bf16.msra.mxu0 %v824_v0  ;;  %723 = vmatpush3.bf16.msra.mxu1 %v824_v0  ;;  %v832_v4 = vld [vmem:[%s1161_s9] sm:$0xff]   ;;  %v828_v6 = vld [vmem:[#allocation5 + $0x18] sm:$0xff]   ;;  %v829_v7 = vld [vmem:[#allocation5 + $0x10] sm:$0xff]   ;;  %s507_s6 = sshll.u32 %s248_s14, 4  ;;  %s645_s18 = sshll.u32 %s504_s26, 6  ;;  %s1185_s6 = int_to_ptr.vmem [resolvable:$true] %s507_s6 }
  0x4c   : > { %693 = vmatprep.subr.bf16.mxu0 %v825_v1  ;;  %716 = vmatprep.subr.bf16.mxu1 %v825_v1  ;;  %v830_v8 = vld [vmem:[#allocation5 + $0x8] sm:$0xff]   ;;  %v831_v9 = vld [vmem:[#allocation5] sm:$0xff]   ;;  %v835_v11 = vld [vmem:[%s1161_s9 + $0x18] sm:$0xff]   ;;  %s1274_s13 = sld [smem:[#allocation16_spill]]  ;;  %s492_s24 = scalar_lea.sflag [#allocation4], %s1155_s28 }
  0x4d   : > { %707 = vmatprep.mubr.bf16.mxu0 %v832_v4  ;;  %711 = vmatprep.mubr.bf16.mxu1 %v833_v5  ;;  %v834_v10 = vld [vmem:[%s1161_s9 + $0x8] sm:$0xff]   ;;  %v632_v12 = vld [vmem:[%s1245_s2] ss:$0 sm:$0xff]  ;;  %s890_s4 = scalar_lea.vmem %s1185_s6, 512  ;;  %s996_s20 = smov [#allocation7]  }
  0x4e   : > { %v633_v19 = vld [vmem:[%s1246_s3] ss:$0 sm:$0xff]  ;;  %p891_p1 = scmp.ne.s32.totalorder %s1185_s6, %s890_s4  ;;  %s894_s30 = sshll.u32 %s996_s20, 4  ;;  %s895_s30 = int_to_ptr.vmem [resolvable:$false] %s894_s30 }
  0x4f   : > { %694 = vmatpush3.bf16.msra.mxu0 %v825_v1  ;;  %724 = vmatpush3.bf16.msra.mxu1 %v825_v1  ;;  %s896_s5 = scalar_lea.vmem %s895_s30, 1024  ;;  %p897_p2 = scmp.lt.s32.totalorder %s1185_s6, %s895_s30 }
  0x50   : > { %695 = vmatprep.subr.bf16.mxu0 %v826_v2  ;;  %717 = vmatprep.subr.bf16.mxu1 %v826_v2  ;;  %p892_p8 = pnand %p891_p1, %p1115_p11  ;;  %p898_p0 = scmp.lt.s32.totalorder %s896_s5, %s890_s4 }
  0x52   : > { %s1190_s11 = scalar_lea.hbm %s1274_s13, %s645_s18  ;;  %p893_p13 = pneg %p892_p8 }
  0x53   : > { %696 = vmatpush3.bf16.msra.mxu0 %v826_v2  ;;  %725 = vmatpush3.bf16.msra.mxu1 %v826_v2  ;;  %p899_p3 = por %p898_p0, %p897_p2 }
  0x54   : > { %697 = vmatprep.subr.bf16.mxu0 %v827_v3  ;;  %718 = vmatprep.subr.bf16.mxu1 %v827_v3 }
  0x55   : > { %p900_p5 = pnand %p899_p3, %p893_p13 }
  0x57   : > { %698 = vmatpush3.bf16.msra.mxu0 %v827_v3  ;;  %726 = vmatpush3.bf16.msra.mxu1 %v827_v3 }
  0x58   : > { %699 = vmatprep.subr.bf16.mxu0 %v828_v6  ;;  %719 = vmatprep.subr.bf16.mxu1 %v828_v6 }
  0x5b   : > { %700 = vmatpush3.bf16.msra.mxu0 %v828_v6  ;;  %727 = vmatpush3.bf16.msra.mxu1 %v828_v6 }
  0x5c   : > { %701 = vmatprep.subr.bf16.mxu0 %v829_v7  ;;  %720 = vmatprep.subr.bf16.mxu1 %v829_v7 }
  0x5f   : > { %702 = vmatpush3.bf16.msra.mxu0 %v829_v7  ;;  %728 = vmatpush3.bf16.msra.mxu1 %v829_v7 }
  0x60   : > { %703 = vmatprep.subr.bf16.mxu0 %v830_v8  ;;  %721 = vmatprep.subr.bf16.mxu1 %v830_v8 }
  0x63   : > { %704 = vmatpush3.bf16.msra.mxu0 %v830_v8  ;;  %729 = vmatpush3.bf16.msra.mxu1 %v830_v8 }
  0x64   : > { %705 = vmatprep.subr.bf16.mxu0 %v831_v9  ;;  %722 = vmatprep.subr.bf16.mxu1 %v831_v9 }
  0x67   : > { %706 = vmatpush3.bf16.msra.mxu0 %v831_v9  ;;  %730 = vmatpush3.bf16.msra.mxu1 %v831_v9 }
  0x6a   : > { %708 = vmatmul.mubr.bf16.vlgmr.msra.gmra.mxu0 %v834_v10  ;;  %712 = vmatmul.mubr.bf16.vlgmr.msra.gmra.mxu1 %v835_v11 }
 0x12a   : > { %v709_v13 = vpop.f32.mrf.mxu0  ;;  %v713_v14 = vpop.f32.mrf.mxu1 }
 0x12b   : > { %v422_v15 = vmul.f32 %v709_v13, %v632_v12  ;;  %v426_v16 = vmul.f32 %v713_v14, %v632_v12 }
 0x12c   : > { %v382_v17 = vpop.f32.mrf.mxu0  ;;  %v398_v18 = vpop.f32.mrf.mxu1 }
 0x12d   : > { %v420_v20 = vmul.f32 %v632_v12, %v382_v17  ;;  %v424_v21 = vmul.f32 %v632_v12, %v398_v18  ;;  %v437_v24 = vadd.f32 %v633_v19, %v422_v15  ;;  %v441_v25 = vadd.f32 %v633_v19, %v426_v16 }
 0x12e   : > { %v710_v22 = vpop.f32.mrf.mxu0  ;;  %v714_v23 = vpop.f32.mrf.mxu1 }
 0x12f   : > { %v423_v26 = vmul.f32 %v710_v22, %v632_v12  ;;  %v427_v27 = vmul.f32 %v714_v23, %v632_v12  ;;  %v435_v30 = vadd.f32 %v633_v19, %v420_v20  ;;  %v439_v31 = vadd.f32 %v633_v19, %v424_v21 }
 0x130   : > { %v385_v28 = vpop.f32.mrf.mxu0  ;;  %v401_v29 = vpop.f32.mrf.mxu1  ;;  %v445_v38 = vmax.f32 %v437_v24, 0.0  ;;  %v449_v39 = vmax.f32 %v441_v25, 0.0 }
 0x131   : > { %v421_v32 = vmul.f32 %v632_v12, %v385_v28  ;;  %v425_v33 = vmul.f32 %v632_v12, %v401_v29  ;;  %v438_v34 = vadd.f32 %v633_v19, %v423_v26  ;;  %v442_v35 = vadd.f32 %v633_v19, %v427_v27 }
 0x132   : > { %v443_v42 = vmax.f32 %v435_v30, 0.0  ;;  %v447_v43 = vmax.f32 %v439_v31, 0.0 }
 0x133   : > { %v436_v36 = vadd.f32 %v633_v19, %v421_v32  ;;  %v440_v37 = vadd.f32 %v633_v19, %v425_v33  ;;  %v446_v40 = vmax.f32 %v438_v34, 0.0  ;;  %v450_v41 = vmax.f32 %v442_v35, 0.0 }
 0x135   : > { %v444_v44 = vmax.f32 %v436_v36, 0.0  ;;  %v448_v45 = vmax.f32 %v440_v37, 0.0  ;;  %v664_v46 = vpack.c.bf16 %v446_v40, %v445_v38  ;;  %v674_v47 = vpack.c.bf16 %v450_v41, %v449_v39 }
 0x137   : > { %v659_v48 = vpack.c.bf16 %v444_v44, %v443_v42  ;;  %v669_v49 = vpack.c.bf16 %v448_v45, %v447_v43  ;;  %676 = vst [vmem:[%s248_s14 + $0x8] sm:$0xff] %v664_v46   ;;  %678 = vst [vmem:[%s248_s14 + $0x18] sm:$0xff] %v674_v47  }
 0x139   : > { %660 = vst [vmem:[%s248_s14] sm:$0xff] %v659_v48   ;;  %677 = vst [vmem:[%s248_s14 + $0x10] sm:$0xff] %v669_v49  }
 0x13a   : > { %903 = shalt.err (!%p900_p5)
}
 0x13b   : > { %s904_s9 = scalar_lea.hbm %s1190_s11, 512  ;;  %s908_s27 = scalar_lea.hbm %s1274_s13, 4096 }
 0x13c   : > { %p905_p4 = scmp.ne.s32.totalorder %s1190_s11, %s904_s9  ;;  %p909_p9 = scmp.lt.s32.totalorder %s1190_s11, %s1274_s13 }
 0x13d   : > { %p910_p10 = scmp.lt.s32.totalorder %s908_s27, %s904_s9 }
 0x13e   : > { %p906_p6 = pnand %p905_p4, %p1115_p11 }
 0x13f   : > { %p911_p12 = por %p910_p10, %p909_p9 }
 0x140   : > { %p907_p7 = pneg %p906_p6 }
 0x142   : > { %p912_p1 = pnand %p911_p12, %p907_p7 }
 0x144   : > { %915 = shalt.err (!%p912_p1)
}
 0x145   : > { %s997_s10 = smov 64   ;;  %s998_s26 = smov 4  }
 0x146   : > { %737 = dma.vmem_to_hbm [thread:$0]  (%p1115_p11), %s1185_s6, 512, %s1190_s11, %s492_s24, %s997_s10, %s997_s10, %s998_s26  }
 0x147 PF: > { %s1275_s14 = sld [smem:[#allocation11_spill]]  ;;  %p754_p8 = scmp.ge.s32.totalorder %s990_s22, 2 }
 0x148   : > { %s1276_s18 = sld [smem:[#allocation13_spill]] }
 0x14d   : > { %s522_s19 = sand.u32 1, %s1275_s14  }
 0x14e   : > { %p1277_p13 = scmp.ne.s32.totalorder %s1276_s18, 0  ;;  %s523_s7 = scalar_lea.sflag [#allocation4], %s522_s19 }
 0x150   : > { %p748_p2 = pnand %p754_p8, %p1277_p13 }
 0x152   : > { %p749_p0 = pneg %p748_p2 }
 0x154   : > { %957 = dma.done.wait (%p749_p0), %s523_s7, 512  }
 0x155   : > { %959 = vsyncadd (%p749_p0), %s523_s7, 4294966784  ;;  %s21_s22 = sadd.s32 1, %s990_s22   ;;  %s1278_s18 = sld [smem:[#allocation12_spill]] }
 0x156   : > { %p18_p3 = scmp.ge.s32.totalorder %s21_s22, 10   ;;  %s1279_s20 = sld [smem:[#allocation14_spill]] }
 0x157   : > { %s1280_s15 = smov %s966_s16  ;;  %s1281_s16 = smov %s970_s17 }
 0x158   : > { %s1282_s17 = smov %s1132_s1  ;;  %s1283_s19 = smov %s986_s21 }
 0x159   : > { %s1284_s21 = smov %s1290_s12  ;;  %20 = sbr.rel (!%p18_p3) target bundleno = 11 (0xb), region = 85 }
 0x15e   :  { %528 = vsyncpa [#allocation3], 1 }
 0x15f   :  { %530 = vsyncpa [#allocation3 + $0x1], 1 }
 0x160   :  { %531 = vsyncpa [#allocation6], 1 }
 0x161   :  { %532 = vsyncpa [#allocation4], 1 }
 0x162   :  { %534 = vsyncpa [#allocation4 + $0x1], 1 }

</bundles_post_ra>
